<compile_context>
chip_gen: v6e
topology: v6e:2x2x1
jax: 0.10.0
libtpu: 0.0.40
codegen_flags: <defaults>
</compile_context>

<pallas_src>
import functools

import jax
import jax.numpy as jnp
from jax.experimental import pallas as pl
from jax.experimental.pallas import tpu as pltpu


def _logit_kernel(wb_ref, xt_ref, o_ref):
    # wb_ref: (D+1,) f32 in SMEM  -- [w_0 .. w_{D-1}, b]
    # xt_ref: (D, TN) f32 in VMEM -- N on the lane axis
    # o_ref : (1, TN) f32 in VMEM -- lane-dense output
    D = xt_ref.shape[0]
    acc = xt_ref[pl.ds(0, 1), :] * wb_ref[0]            # (1, TN) VPU mul
    for d in range(1, D):                                # static unroll, D tiny
        acc = acc + xt_ref[pl.ds(d, 1), :] * wb_ref[d]
    o_ref[...] = (acc + wb_ref[D]).astype(o_ref.dtype)   # + bias


def _cost(N, D):
    # xt read + (w,b) read + out write; 2 flops (mul+add) per element per D.
    return pl.CostEstimate(
        flops=2 * N * D,
        transcendentals=0,
        bytes_accessed=D * N * 4 + (D + 1) * 4 + N * 4,
    )


# Lane-axis tile for the large-N path: multiple of 128 (unmasked vst/vld).
# (D+1)*TN*4 ~= 3 MiB per step at D=2, x2 double-buffered ~= 6 MiB VMEM --
# comfortably inside the 32 MiB scoped default on v5e/v6e/v7x.
_TILE_N = 256 * 1024


def logit_forward_dn(xt, weight, bias):
    """Pallas nn.Linear(dim, 1) on (D, N)-layout activations -> (N, 1)."""
    D, N = xt.shape
    xt = jnp.asarray(xt)
    wb = jnp.concatenate(
        [jnp.asarray(weight).reshape(-1), jnp.asarray(bias).reshape(-1)]
    ).astype(jnp.float32)                                # (D+1,) scalars for SMEM

    if N <= _TILE_N:
        # Single whole-array block: no grid, no degenerate pipeline
        # prologue/epilogue, no double-buffering of ~1 KB of data.
        out = pl.pallas_call(
            _logit_kernel,
            out_shape=jax.ShapeDtypeStruct((1, N), xt.dtype),
            in_specs=[
                pl.BlockSpec(memory_space=pltpu.MemorySpace.SMEM),  # wb
                pl.BlockSpec(memory_space=pltpu.MemorySpace.VMEM),  # xt
            ],
            out_specs=pl.BlockSpec(memory_space=pltpu.MemorySpace.VMEM),
            cost_estimate=_cost(N, D),
        )(wb, xt)
    else:
        # Large-N path: tile the lane axis; purely HBM-bandwidth bound.
        out = pl.pallas_call(
            _logit_kernel,
            out_shape=jax.ShapeDtypeStruct((1, N), xt.dtype),
            grid=(pl.cdiv(N, _TILE_N),),
            in_specs=[
                pl.BlockSpec(memory_space=pltpu.MemorySpace.SMEM),      # wb, whole
                pl.BlockSpec((D, _TILE_N), lambda i: (0, i)),           # xt tile
            ],
            out_specs=pl.BlockSpec((1, _TILE_N), lambda i: (0, i)),
            compiler_params=pltpu.CompilerParams(
                dimension_semantics=("parallel",),
            ),
            cost_estimate=_cost(N, D),
        )(wb, xt)

    # (1, N) -> (N, 1) is a pure row-major relabel.
    return out.reshape(N, 1)


# Below this, the custom-call launch dominates ~1 KB of I/O; plain XLA fuses.
_PALLAS_MIN_N = 64 * 1024


def logit_forward(x, weight, bias):
    """Module-faithful entry: x (N, D) -> (N, 1)."""
    N, D = x.shape
    if N < _PALLAS_MIN_N:
        # Small-N fast path: let XLA fuse the 2-flop/row affine map.
        return x @ jnp.asarray(weight).reshape(1, D).T + jnp.asarray(bias).reshape(1)
    # Large N: one layout flip, then the tiled Pallas path.
    # TODO(synk): if the producer can emit (D, N) directly, call
    # logit_forward_dn and skip this transpose entirely.
    return logit_forward_dn(jnp.asarray(x).T, weight, bias)


if __name__ == "__main__":
    key = jax.random.PRNGKey(0)
    k_x, k_w, k_b = jax.random.split(key, 3)

    # Shapes implied by the source script: the MVN sample is (2, 100) and the
    # module sees its transpose, so dim=2, N=100. We keep the producer's
    # natural (D, N) layout and feed the Pallas kernel directly (no transpose).
    N, dim = 100, 2
    x_dn = jax.random.normal(k_x, (dim, N), dtype=jnp.float32)   # producer layout

    # Deterministic nn.Linear-style init: U(-1/sqrt(dim), 1/sqrt(dim)).
    bound = 1.0 / jnp.sqrt(jnp.float32(dim))
    weight = jax.random.uniform(k_w, (1, dim), jnp.float32, -bound, bound)
    bias = jax.random.uniform(k_b, (1,), jnp.float32, -bound, bound)

    # Run the Pallas kernel on the (D, N)-layout activations.
    y = logit_forward_dn(x_dn, weight, bias)
    y = jax.block_until_ready(y)

    # Reference in plain JAX (same math as torch nn.Linear on x = x_dn.T).
    x_nd = x_dn.T                                                # (N, dim)
    y_ref = x_nd @ weight.T + bias
    assert y.shape == (N, 1)
    assert jnp.allclose(y, y_ref, atol=1e-5, rtol=1e-5)

    # The module-faithful dispatcher (small N -> fused XLA path) also matches.
    y_small = jax.block_until_ready(logit_forward(x_nd, weight, bias))
    assert jnp.allclose(y_small, y_ref, atol=1e-5, rtol=1e-5)

    print("KERNEL_OK")
</pallas_src>

<mosaic_0001>
module attributes {stable_mosaic.version = 11 : i64} {
  func.func @_logit_kernel(%arg0: memref<3xf32, #tpu.memory_space<smem>>, %arg1: memref<2x100xf32, #tpu.memory_space<vmem>>, %arg2: memref<1x100xf32, #tpu.memory_space<vmem>>) attributes {dimension_semantics = [], scalar_prefetch = 0 : i64, scratch_operands = 0 : i64, tpu.core_type = #tpu.core_type<tc>} {
    %c0 = arith.constant 0 : index
    %c0_0 = arith.constant 0 : index
    %0 = vector.load %arg1[%c0, %c0_0] : memref<2x100xf32, #tpu.memory_space<vmem>>, vector<1x100xf32>
    %c0_1 = arith.constant 0 : index
    %1 = memref.load %arg0[%c0_1] : memref<3xf32, #tpu.memory_space<smem>>
    %2 = vector.broadcast %1 : f32 to vector<1x100xf32>
    %3 = arith.mulf %0, %2 : vector<1x100xf32>
    %c1 = arith.constant 1 : index
    %c0_2 = arith.constant 0 : index
    %4 = vector.load %arg1[%c1, %c0_2] : memref<2x100xf32, #tpu.memory_space<vmem>>, vector<1x100xf32>
    %c1_3 = arith.constant 1 : index
    %5 = memref.load %arg0[%c1_3] : memref<3xf32, #tpu.memory_space<smem>>
    %6 = vector.broadcast %5 : f32 to vector<1x100xf32>
    %7 = arith.mulf %4, %6 : vector<1x100xf32>
    %8 = arith.addf %3, %7 : vector<1x100xf32>
    %c2 = arith.constant 2 : index
    %9 = memref.load %arg0[%c2] : memref<3xf32, #tpu.memory_space<smem>>
    %10 = vector.broadcast %9 : f32 to vector<1x100xf32>
    %11 = arith.addf %8, %10 : vector<1x100xf32>
    %c0_4 = arith.constant 0 : index
    %c0_5 = arith.constant 0 : index
    %12 = vector.load %arg2[%c0_4, %c0_5] : memref<1x100xf32, #tpu.memory_space<vmem>>, vector<1x100xf32>
    tpu.vector_store %arg2[%c0_4, %c0_5], %11 {strides = array<i32>} : memref<1x100xf32, #tpu.memory_space<vmem>>, vector<1x100xf32>,
    return
  }
}

</mosaic_0001>

<bundles_post_ra>
// kernel: tpu_custom_call.1
= control target key start
LH: loop header
LB: loop body
LE: loop exit
PB: predicated region body
PF: predicated region fallthrough
CT: control target
= control target key end

     0   :  { %7 = vsyncpa [#allocation5], 0  ;;  %s151_s0 = inlined_call_operand.hbm [shape: f32[3], index: 0, kind: input, shape index: {}]   ;;  %s152_s1 = inlined_call_operand.hbm [shape: f32[2,100], index: 1, kind: input, shape index: {}]   ;;  %s153_s2 = inlined_call_operand.hbm [shape: f32[1,100], index: 2, kind: output, shape index: {}]  }
   0x1   :  { %8 = vsyncpa [#allocation3], 0 }
   0x2   :  { %9 = vsyncpa [#allocation4], 0  ;;  %s124_s9 = smov [#allocation2]   ;;  %s125_s12 = smov [#allocation6]  }
   0x3   :  { %17 = dma.hbm_to_smem %s151_s0, 16, %s124_s9, [#allocation5]  }
   0x4   :  { %s24_s13 = sshll.u32 %s125_s12, 4  ;;  %s25_s13 = int_to_ptr.vmem [resolvable:$true] %s24_s13 }
   0x5   :  { %s86_s14 = scalar_lea.vmem %s25_s13, 32  ;;  %p91_p1 = scmp.lt.s32.totalorder %s25_s13, %s25_s13 }
   0x6   :  { %p87_p0 = scmp.ne.s32.totalorder %s25_s13, %s86_s14  ;;  %p92_p2 = scmp.lt.s32.totalorder %s86_s14, %s86_s14 }
   0x8   :  { %p93_p3 = por %p92_p2, %p91_p1 }
   0xa   :  { %p94_p4 = pnand %p93_p3, %p87_p0 }
   0xc   :  { %97 = shalt.err (!%p94_p4)
}
   0xd   :  { %27 = dma.hbm_to_vmem [thread:$0]  %s152_s1, 32, %s25_s13, [#allocation3]  }
   0xe   :  { %118 = dma.done.wait [#allocation5], 16  }
   0xf   :  { %119 = vsyncadd [#allocation5], 4294967280 }
  0x10   :  { %120 = dma.done.wait [#allocation3], 32  }
  0x11   :  { %121 = vsyncadd [#allocation3], 4294967264 }
  0x12   :  { %34 = sfence }
  0x13   :  { %s36_s0 = sld [smem:[#allocation2]]  ;;  %v35_v0 = vld [vmem:[#allocation6] sm:$0x1]  ;;  %v39_v1 = vld [vmem:[#allocation6 + $0x1] sm:$0x1]  ;;  %s126_s19 = smov [#allocation7]  }
  0x14   :  { %s65_s17 = sld [smem:[#allocation2 + $0x1]]  ;;  %s55_s20 = sshll.u32 %s126_s19, 4  ;;  %vm47_vm0 = vcmask 811008   ;;  %s56_s20 = int_to_ptr.vmem [resolvable:$true] %s55_s20 }
  0x15   :  { %s66_s18 = sld [smem:[#allocation2 + $0x2]]  ;;  %s98_s1 = scalar_lea.vmem %s56_s20, 16 }
  0x16   :  { %p99_p5 = scmp.ne.s32.totalorder %s56_s20, %s98_s1  ;;  %s102_s21 = scalar_lea.vmem %s56_s20, 32 }
  0x17   :  { %p103_p6 = scmp.lt.s32.totalorder %s56_s20, %s56_s20  ;;  %p104_p7 = scmp.lt.s32.totalorder %s102_s21, %s98_s1 }
  0x19   :  { %v37_v2 = vstv %s36_s0  ;;  %p105_p8 = por %p104_p7, %p103_p6 }
  0x1a   :  { %v38_v3 = vmul.f32 %v37_v2, %v35_v0  ;;  %v41_v4 = vstv %s65_s17 }
  0x1b   :  { %v42_v5 = vmul.f32 %v41_v4, %v39_v1  ;;  %v45_v6 = vstv %s66_s18  ;;  %p106_p9 = pnand %p105_p8, %p99_p5 }
  0x1d   :  { %v43_v7 = vadd.f32 %v42_v5, %v38_v3 }
  0x1f   :  { %v46_v8 = vadd.f32 %v45_v6, %v43_v7 }
  0x21   :  { %48 = vst.msk [vmem:[#allocation7] sm:$0x1] %vm47_vm0, %v46_v8 }
  0x22   :  { %109 = shalt.err (!%p106_p9)
}
  0x23   :  { %58 = dma.vmem_to_hbm [thread:$0]  %s56_s20, 16, %s153_s2, [#allocation4]  }
  0x24   :  { %122 = dma.done.wait [#allocation4], 16  }
  0x25   :  { %123 = vsyncadd [#allocation4], 4294967280 }
  0x26   :  { %62 = vsyncpa [#allocation3], 1 }
  0x27   :  { %63 = vsyncpa [#allocation4], 1 }
  0x28   :  { %64 = vsyncpa [#allocation5], 1 }

</bundles_post_ra>
